<compile_context>
chip_gen: v5e
topology: v5e:2x2
jax: 0.10.0
libtpu: 0.0.40
codegen_flags: <defaults>
</compile_context>

<pallas_src>
import numpy as np
import jax
import jax.numpy as jnp
from jax.experimental import pallas as pl
from jax.experimental.pallas import tpu as pltpu


# ----------------------------------------------------------------------------
# Kernel: grid = (dst tiles, src/rel tiles); the src/rel (reduction) axis is last.
# ----------------------------------------------------------------------------
def _union_rgcn_kernel(adj_ref, hw_ref, h_dst_ref, wloop_ref, norm_ref, mask_ref,
                       out_ref, acc_ref):
    k = pl.program_id(1)
    nk = pl.num_programs(1)
    F = out_ref.shape[1]  # padded feature width (multiple of 128)

    @pl.when(k == 0)
    def _init():
        acc_ref[...] = jnp.zeros_like(acc_ref)

    # Neighbor + relation messages, accumulated over source tiles:
    #   acc += adj[dst_tile, k_tile] @ hw[k_tile]
    # adj holds int8 edge counts (incl. relation "virtual source" columns); the
    # int8 -> bf16 cast is VPU work hidden under the adj DMA.
    acc_ref[...] += jnp.dot(adj_ref[...].astype(jnp.bfloat16), hw_ref[...],
                            preferred_element_type=jnp.float32)

    @pl.when(k == nk - 1)
    def _finalize():
        # Self-loop message, fused: h_dst @ [loop_w | evolve_loop_w], selecting the
        # loop_weight half for nodes with in-degree > 0 (masked_index semantics).
        loop2 = jnp.dot(h_dst_ref[...], wloop_ref[...],
                        preferred_element_type=jnp.float32)          # (tm, 2F)
        loop = jnp.where(mask_ref[...] > 0.0, loop2[:, :F], loop2[:, F:])
        # apply_func: h = (sum of msgs) * norm ; then add the self-loop message.
        out_ref[...] = (acc_ref[...] * norm_ref[...] + loop).astype(out_ref.dtype)


def _round_up(x, m):
    return ((x + m - 1) // m) * m


def _pad2(x, rows, cols, dtype):
    out = jnp.zeros((rows, cols), dtype)
    return out.at[:x.shape[0], :x.shape[1]].set(x.astype(dtype))


def union_rgcn_forward(h, weight_neighbor, loop_weight, evolve_loop_weight,
                       emb_rel, src, dst, rel, norm, *, tm=256, tk=512):
    """Plain-JAX glue (hoisted h@Wn / emb@Wn, int8 count scatter, padding) +
    one tiled pallas_call for the dominant O(N*K*F) aggregation matmul."""
    N, F = h.shape
    R = emb_rel.shape[0]
    f32, bf16 = jnp.float32, jnp.bfloat16

    Fp = _round_up(F, 128)                    # lane-dense feature axis

    # Auto-shrink tiles for small graphs; prefer >= 2 dst tiles so both v7x
    # TensorCores get work (no-op on single-TC v5e/v6e).
    Np_min = _round_up(N, 128)
    tm_eff = min(tm, Np_min)
    if Np_min // tm_eff < 2 and tm_eff > 128:
        tm_eff = max(128, _round_up(Np_min // 2, 128))
    K_min = _round_up(N + R, 128)
    tk_eff = min(tk, K_min)

    Np = _round_up(N, tm_eff)                 # dst rows (padded)
    Kp = _round_up(N + R, tk_eff)             # source nodes + relation virtual nodes

    # ---- Hoisted O(N*F^2) matmuls (plain XLA), cast to bf16 once.
    hw = (h.astype(f32) @ weight_neighbor.astype(f32)).astype(bf16)        # (N, F)
    relw = (emb_rel.astype(f32) @ weight_neighbor.astype(f32)).astype(bf16)  # (R, F)
    hw_ext = jnp.zeros((Kp, Fp), bf16)
    hw_ext = hw_ext.at[:N, :F].set(hw).at[N:N + R, :F].set(relw)

    # ---- int8 edge-count matrix (adj columns N..N+R are the relation counts).
    one = jnp.ones_like(src, dtype=jnp.int8)
    adj = (jnp.zeros((Np, Kp), jnp.int8)
           .at[dst, src].add(one)
           .at[dst, N + rel].add(one))

    in_deg = jnp.zeros((Np,), f32).at[dst].add(1.0)
    mask_p = (in_deg > 0).astype(f32).reshape(Np, 1)
    norm_p = jnp.ones((Np, 1), f32).at[:N, 0].set(norm.reshape(-1).astype(f32))

    # Self-loop operands: dst-node features and fused [loop_w | evolve_loop_w].
    h_dst_p = _pad2(h, Np, Fp, bf16)
    wloop_p = jnp.zeros((Fp, 2 * Fp), bf16)
    wloop_p = wloop_p.at[:F, :F].set(loop_weight.astype(bf16))
    wloop_p = wloop_p.at[:F, Fp:Fp + F].set(evolve_loop_weight.astype(bf16))

    grid = (Np // tm_eff, Kp // tk_eff)

    def _vmem_bytes():
        b = 2 * tm_eff * tk_eff * 1          # adj tile (int8, double-buffered)
        b += 2 * tk_eff * Fp * 2             # hw tile (bf16)
        b += 2 * tm_eff * Fp * 2             # h_dst tile (bf16)
        b += 2 * Fp * (2 * Fp) * 2           # [loop_w | evolve_loop_w] (resident)
        b += 2 * 2 * tm_eff * 128 * 4        # norm + mask (lane padded)
        b += 2 * tm_eff * Fp * 4             # output tile
        b += tm_eff * Fp * 4                 # accumulator scratch
        return b

    # Per-generation VMEM cap: v5e/v6e have 128 MiB per TC, v7x only 64 MiB.
    try:
        vmem_cap = int(getattr(pltpu.get_tpu_info(), "vmem_capacity_bytes",
                               64 * 1024 * 1024))
    except Exception:
        vmem_cap = 64 * 1024 * 1024
    vmem_limit = int(min(max(2 * _vmem_bytes(), 32 * 1024 * 1024),
                         int(0.75 * vmem_cap)))

    cost = pl.CostEstimate(
        flops=2 * Np * Kp * Fp + 2 * Np * Fp * (2 * Fp),
        transcendentals=0,
        bytes_accessed=(Np * Kp * 1 + Kp * Fp * 2 + Np * Fp * 2
                        + Fp * 2 * Fp * 2 + Np * Fp * 4 + 2 * Np * 4),
    )

    out_p = pl.pallas_call(
        _union_rgcn_kernel,
        out_shape=jax.ShapeDtypeStruct((Np, Fp), f32),
        grid=grid,
        in_specs=[
            pl.BlockSpec((tm_eff, tk_eff), lambda i, k: (i, k)),   # int8 edge counts
            pl.BlockSpec((tk_eff, Fp),     lambda i, k: (k, 0)),   # [h | emb_rel] @ Wn
            pl.BlockSpec((tm_eff, Fp),     lambda i, k: (i, 0)),   # h (dst rows)
            pl.BlockSpec((Fp, 2 * Fp),     lambda i, k: (0, 0)),   # [loop_w | evolve_loop_w]
            pl.BlockSpec((tm_eff, 1),      lambda i, k: (i, 0)),   # norm
            pl.BlockSpec((tm_eff, 1),      lambda i, k: (i, 0)),   # in-degree mask
        ],
        out_specs=pl.BlockSpec((tm_eff, Fp), lambda i, k: (i, 0)),
        scratch_shapes=[pltpu.VMEM((tm_eff, Fp), f32)],            # message accumulator
        compiler_params=pltpu.CompilerParams(
            dimension_semantics=("parallel", "arbitrary"),
            vmem_limit_bytes=vmem_limit),
        cost_estimate=cost,
    )(adj, hw_ext, h_dst_p, wloop_p, norm_p, mask_p)

    return out_p[:N, :F]


# ----------------------------------------------------------------------------
# Reference + deterministic init + test.
# ----------------------------------------------------------------------------
def xavier_uniform(key, fan_in, fan_out, gain):
    bound = gain * np.sqrt(6.0 / (fan_in + fan_out))
    return jax.random.uniform(key, (fan_in, fan_out), jnp.float32, -bound, bound)


def reference_forward(h, wn, lw, elw, emb_rel, src, dst, rel, norm):
    """Pure-JAX f32 reference matching the PyTorch edge-wise semantics."""
    N, F = h.shape
    in_deg = jnp.zeros((N,), jnp.float32).at[dst].add(1.0)
    loop_message = jnp.where((in_deg > 0)[:, None], h @ lw, h @ elw)
    msg = (h[src] + emb_rel[rel]) @ wn                        # (E, F)
    agg = jnp.zeros((N, F), jnp.float32).at[dst].add(msg)     # fn.sum
    return agg * norm.reshape(N, 1) + loop_message


if __name__ == "__main__":
    key = jax.random.PRNGKey(0)
    ks = jax.random.split(key, 8)

    # Small synthetic graph consistent with the module (in_feat == out_feat).
    N, F, NUM_RELS, E = 200, 96, 11, 800
    gain = float(np.sqrt(2.0))  # nn.init.calculate_gain('relu')

    h       = jax.random.normal(ks[0], (N, F), jnp.float32)
    emb_rel = jax.random.normal(ks[1], (NUM_RELS, F), jnp.float32)
    wn      = xavier_uniform(ks[2], F, F, gain)   # weight_neighbor
    lw      = xavier_uniform(ks[3], F, F, gain)   # loop_weight
    elw     = xavier_uniform(ks[4], F, F, gain)   # evolve_loop_weight

    src = jax.random.randint(ks[5], (E,), 0, N)
    dst = jax.random.randint(ks[6], (E,), 0, N)
    rel = jax.random.randint(ks[7], (E,), 0, NUM_RELS)

    # g.ndata['norm'] = 1 / in_degree (1.0 for isolated nodes).
    in_deg = jnp.zeros((N,), jnp.float32).at[dst].add(1.0)
    norm = jnp.where(in_deg > 0, 1.0 / jnp.maximum(in_deg, 1.0), 1.0)

    out = union_rgcn_forward(h, wn, lw, elw, emb_rel, src, dst, rel, norm)
    out = jax.block_until_ready(out)

    # Compare against the true f32 reference; tolerance covers the bf16 MXU
    # operands (f32 accumulation) used by the kernel path.
    ref = reference_forward(h, wn, lw, elw, emb_rel, src, dst, rel, norm)
    np.testing.assert_allclose(np.asarray(out), np.asarray(ref), rtol=2e-2, atol=5e-2)

    print("KERNEL_OK")
</pallas_src>

<mosaic_0001>
module attributes {stable_mosaic.version = 11 : i64} {
  func.func @_union_rgcn_kernel(%arg0: i32, %arg1: i32, %arg2: memref<128x256xi8, #tpu.memory_space<vmem>>, %arg3: memref<256x128xbf16, #tpu.memory_space<vmem>>, %arg4: memref<128x128xbf16, #tpu.memory_space<vmem>>, %arg5: memref<128x256xbf16, #tpu.memory_space<vmem>>, %arg6: memref<128x1xf32, #tpu.memory_space<vmem>>, %arg7: memref<128x1xf32, #tpu.memory_space<vmem>>, %arg8: memref<128x128xf32, #tpu.memory_space<vmem>>, %arg9: memref<128x128xf32, #tpu.memory_space<vmem>>) attributes {dimension_semantics = [#tpu.dimension_semantics<parallel>, #tpu.dimension_semantics<arbitrary>], iteration_bounds = array<i64: 2, 1>, scalar_prefetch = 0 : i64, scratch_operands = 1 : i64, tpu.core_type = #tpu.core_type<tc>, window_params = [{transform_indices = @transform_0, window_bounds = array<i64: 128, 256>}, {transform_indices = @transform_1, window_bounds = array<i64: 256, 128>}, {transform_indices = @transform_2, window_bounds = array<i64: 128, 128>}, {pipeline_mode = #tpu.pipeline_mode<synchronous>, transform_indices = @transform_3, window_bounds = array<i64: 128, 256>}, {transform_indices = @transform_4, window_bounds = array<i64: 128, 1>}, {transform_indices = @transform_5, window_bounds = array<i64: 128, 1>}, {transform_indices = @transform_6, window_bounds = array<i64: 128, 128>}]} {
    %c0_i32 = arith.constant 0 : i32
    %0 = arith.cmpi eq, %arg1, %c0_i32 : i32
    %1 = arith.extui %0 : i1 to i32
    %c0_i32_0 = arith.constant 0 : i32
    %2 = arith.cmpi ne, %1, %c0_i32_0 : i32
    scf.if %2 {
      %cst_10 = arith.constant 0.000000e+00 : f32
      %13 = vector.broadcast %cst_10 : f32 to vector<128x128xf32>
      %c0_11 = arith.constant 0 : index
      %c0_12 = arith.constant 0 : index
      %14 = vector.load %arg9[%c0_11, %c0_12] : memref<128x128xf32, #tpu.memory_space<vmem>>, vector<128x128xf32>
      tpu.vector_store %arg9[%c0_11, %c0_12], %13 {strides = array<i32>} : memref<128x128xf32, #tpu.memory_space<vmem>>, vector<128x128xf32>,
    } else {
    }
    %c0 = arith.constant 0 : index
    %c0_1 = arith.constant 0 : index
    %3 = vector.load %arg9[%c0, %c0_1] : memref<128x128xf32, #tpu.memory_space<vmem>>, vector<128x128xf32>
    %c0_2 = arith.constant 0 : index
    %c0_3 = arith.constant 0 : index
    %4 = vector.load %arg2[%c0_2, %c0_3] : memref<128x256xi8, #tpu.memory_space<vmem>>, vector<128x256xi8>
    %5 = arith.sitofp %4 : vector<128x256xi8> to vector<128x256xbf16>
    %c0_4 = arith.constant 0 : index
    %c0_5 = arith.constant 0 : index
    %6 = vector.load %arg3[%c0_4, %c0_5] : memref<256x128xbf16, #tpu.memory_space<vmem>>, vector<256x128xbf16>
    %cst = arith.constant dense<0.000000e+00> : vector<128x128xf32>
    %7 = tpu.matmul %5, %6, %cst {dimension_numbers = #tpu.dot_dimension_numbers<[1], [0], [0], [1], [0, 0, 1, 1], [], []>} : vector<128x256xbf16>, vector<256x128xbf16>, vector<128x128xf32> -> vector<128x128xf32>
    %8 = arith.addf %3, %7 : vector<128x128xf32>
    %c0_6 = arith.constant 0 : index
    %c0_7 = arith.constant 0 : index
    %9 = vector.load %arg9[%c0_6, %c0_7] : memref<128x128xf32, #tpu.memory_space<vmem>>, vector<128x128xf32>
    tpu.vector_store %arg9[%c0_6, %c0_7], %8 {strides = array<i32>} : memref<128x128xf32, #tpu.memory_space<vmem>>, vector<128x128xf32>,
    %c0_i32_8 = arith.constant 0 : i32
    %10 = arith.cmpi eq, %arg1, %c0_i32_8 : i32
    %11 = arith.extui %10 : i1 to i32
    %c0_i32_9 = arith.constant 0 : i32
    %12 = arith.cmpi ne, %11, %c0_i32_9 : i32
    scf.if %12 {
      %c0_10 = arith.constant 0 : index
      %c0_11 = arith.constant 0 : index
      %13 = vector.load %arg4[%c0_10, %c0_11] : memref<128x128xbf16, #tpu.memory_space<vmem>>, vector<128x128xbf16>
      %c0_12 = arith.constant 0 : index
      %c0_13 = arith.constant 0 : index
      %14 = vector.load %arg5[%c0_12, %c0_13] : memref<128x256xbf16, #tpu.memory_space<vmem>>, vector<128x256xbf16>
      %cst_14 = arith.constant dense<0.000000e+00> : vector<128x256xf32>
      %15 = tpu.matmul %13, %14, %cst_14 {dimension_numbers = #tpu.dot_dimension_numbers<[1], [0], [0], [1], [0, 0, 1, 1], [], []>} : vector<128x128xbf16>, vector<128x256xbf16>, vector<128x256xf32> -> vector<128x256xf32>
      %c0_15 = arith.constant 0 : index
      %c0_16 = arith.constant 0 : index
      %16 = vector.load %arg7[%c0_15, %c0_16] : memref<128x1xf32, #tpu.memory_space<vmem>>, vector<128x1xf32>
      %cst_17 = arith.constant 0.000000e+00 : f32
      %17 = vector.broadcast %cst_17 : f32 to vector<128x1xf32>
      %18 = arith.cmpf ogt, %16, %17 : vector<128x1xf32>
      %19 = vector.extract_strided_slice %15 {offsets = [0, 0], sizes = [128, 128], strides = [1, 1]} : vector<128x256xf32> to vector<128x128xf32>
      %20 = vector.extract_strided_slice %15 {offsets = [0, 128], sizes = [128, 128], strides = [1, 1]} : vector<128x256xf32> to vector<128x128xf32>
      %21 = vector.shape_cast %18 : vector<128x1xi1> to vector<128x1xi1>
      %22 = vector.broadcast %21 : vector<128x1xi1> to vector<128x128xi1>
      %23 = arith.select %22, %19, %20 : vector<128x128xi1>, vector<128x128xf32>
      %c0_18 = arith.constant 0 : index
      %c0_19 = arith.constant 0 : index
      %24 = vector.load %arg9[%c0_18, %c0_19] : memref<128x128xf32, #tpu.memory_space<vmem>>, vector<128x128xf32>
      %c0_20 = arith.constant 0 : index
      %c0_21 = arith.constant 0 : index
      %25 = vector.load %arg6[%c0_20, %c0_21] : memref<128x1xf32, #tpu.memory_space<vmem>>, vector<128x1xf32>
      %26 = vector.broadcast %25 : vector<128x1xf32> to vector<128x128xf32>
      %27 = arith.mulf %24, %26 : vector<128x128xf32>
      %28 = arith.addf %27, %23 : vector<128x128xf32>
      %c0_22 = arith.constant 0 : index
      %c0_23 = arith.constant 0 : index
      %29 = vector.load %arg8[%c0_22, %c0_23] : memref<128x128xf32, #tpu.memory_space<vmem>>, vector<128x128xf32>
      tpu.vector_store %arg8[%c0_22, %c0_23], %28 {strides = array<i32>} : memref<128x128xf32, #tpu.memory_space<vmem>>, vector<128x128xf32>,
    } else {
    }
    return
  }
  func.func @transform_0(%arg0: i32, %arg1: i32) -> (i32, i32) {
    %c0_i32 = arith.constant 0 : i32
    return %arg0, %arg1 : i32, i32
  }
  func.func @transform_1(%arg0: i32, %arg1: i32) -> (i32, i32) {
    %c0_i32 = arith.constant 0 : i32
    %c0_i32_0 = arith.constant 0 : i32
    return %arg1, %c0_i32 : i32, i32
  }
  func.func @transform_2(%arg0: i32, %arg1: i32) -> (i32, i32) {
    %c0_i32 = arith.constant 0 : i32
    %c0_i32_0 = arith.constant 0 : i32
    return %arg0, %c0_i32 : i32, i32
  }
  func.func @transform_3(%arg0: i32, %arg1: i32) -> (i32, i32) {
    %c0_i32 = arith.constant 0 : i32
    %c0_i32_0 = arith.constant 0 : i32
    %c0_i32_1 = arith.constant 0 : i32
    return %c0_i32, %c0_i32_0 : i32, i32
  }
  func.func @transform_4(%arg0: i32, %arg1: i32) -> (i32, i32) {
    %c0_i32 = arith.constant 0 : i32
    %c0_i32_0 = arith.constant 0 : i32
    return %arg0, %c0_i32 : i32, i32
  }
  func.func @transform_5(%arg0: i32, %arg1: i32) -> (i32, i32) {
    %c0_i32 = arith.constant 0 : i32
    %c0_i32_0 = arith.constant 0 : i32
    return %arg0, %c0_i32 : i32, i32
  }
  func.func @transform_6(%arg0: i32, %arg1: i32) -> (i32, i32) {
    %c0_i32 = arith.constant 0 : i32
    %c0_i32_0 = arith.constant 0 : i32
    return %arg0, %c0_i32 : i32, i32
  }
}

</mosaic_0001>

<bundles_post_ra>
// kernel: tpu_custom_call.1
= control target key start
LH: loop header
LB: loop body
LE: loop exit
PB: predicated region body
PF: predicated region fallthrough
CT: control target
= control target key end

     0   :  { %11 = vsyncpa [#allocation4], 0  ;;  %s2273_s0 = inlined_call_operand.vmem [shape: s8[256,256], index: 0, kind: input, shape index: {}]   ;;  %s2274_s1 = inlined_call_operand.vmem [shape: bf16[256,128], index: 1, kind: input, shape index: {}]   ;;  %s2275_s2 = inlined_call_operand.vmem [shape: bf16[256,128], index: 2, kind: input, shape index: {}]   ;;  %s2276_s3 = inlined_call_operand.vmem [shape: bf16[128,256], index: 3, kind: input, shape index: {}]   ;;  %s2277_s4 = inlined_call_operand.vmem [shape: f32[256,1], index: 4, kind: input, shape index: {}]   ;;  %s2278_s5 = inlined_call_operand.vmem [shape: f32[256,1], index: 5, kind: input, shape index: {}]   ;;  %s2279_s6 = inlined_call_operand.hbm [shape: f32[256,128], index: 6, kind: output, shape index: {}]  }
   0x1   :  { %13 = vsyncpa [#allocation4 + $0x1], 0  ;;  %s1848_s21 = smov 0   ;;  %s1850_s22 = smov 0  }
   0x2   :  { %s1852_s23 = smov 0   ;;  %s1854_s24 = smov 0  }
   0x3   :  { %s1856_s25 = smov 0   ;;  %s1858_s26 = smov 0  }
   0x4 LB: > { %s1446_s27 = sadd.s32 4294967295, %s1808_s26   ;;  %s1447_s28 = sadd.s32 4294967294, %s1808_s26   ;;  %s1808_s26 = sphi %s1858_s26, %s19_s26   ;;  %s1804_s25 = sphi %s1856_s25, %s2289_s25   ;;  %s1800_s24 = sphi %s1854_s24, %s2288_s24   ;;  %s1796_s23 = sphi %s1852_s23, %s2287_s23   ;;  %s1792_s22 = sphi %s1850_s22, %s2286_s22   ;;  %s1788_s21 = sphi %s1848_s21, %s2285_s21  }
   0x5   : > { %s31_s29 = sadd.s32 1, %s1804_s25  ;;  %s191_s30 = sadd.s32 1, %s1796_s23 }
   0x6   : > { %p33_p0 = scmp.ge.s32.totalorder %s31_s29, 2  ;;  %p201_p1 = scmp.ne.s32.totalorder %s1796_s23, %s1792_s22 }
   0x7   : > { %p202_p2 = scmp.eq.s32.totalorder %s1446_s27, 1  ;;  %p207_p3 = scmp.ne.s32.totalorder %s1792_s22, %s1788_s21 }
   0x8   : > { %s2291_s29 = smov (%p33_p0, %s31_s29), 0  ;;  %p208_p5 = scmp.eq.s32.totalorder %s1447_s28, 1 }
   0x9   : > { %p1888_p4 = por %p202_p2, %p201_p1  ;;  %s188_s8 = ssub.s32 %s1804_s25, %s2291_s29 }
   0xa   : > { %p1451_p6 = scmp.ge.s32.totalorder %s1808_s26, 1  ;;  %p189_p7 = scmp.eq.s32.totalorder %s188_s8, 0 }
   0xb   : > { %p1895_p8 = por %p208_p5, %p207_p3  ;;  %p280_p9 = scmp.lt.s32.totalorder %s1808_s26, 3 }
   0xc   : > { %s1901_s10 = scalar_select %p189_p7, %s1796_s23, %s191_s30  }
   0xd   : > { %p281_p10 = pnand %p1451_p6, %p280_p9 }
   0xe   : > { %s1456_s17 = sshll.u32 (!%p281_p10), %s1800_s24, 4  ;;  %s1453_s16 = sshll.u32 (!%p281_p10), %s1800_s24, 2 }
   0xf   : > { %284 = sbr.rel (%p281_p10) target bundleno = 316 (0x13c), region = 44  ;;  %p354_p11 = scmp.lt.s32.totalorder (!%p281_p10), %s1456_s17, 31 }
  0x10   : > { %p1967_p12 = scmp.lt.s32.totalorder (!%p281_p10), %s1453_s16, 7  ;;  %s1668_s12 = sshll.u32 (!%p281_p10), %s1800_s24, 7 }
  0x14   : > { %v1635_v0 = vld [vmem:[%s2274_s1 + $0x38] sm:$0xff]  ;;  %v1616_v2 = vld [vmem:[%s2276_s3 + $0x70] sm:$0xf]  ;;  %v1666_v4 = vld [vmem:[%s2276_s3 + $0x74] sm:$0xf]  ;;  %v1810_v6 = vmov 0  }
  0x15   : > { %v1643_v1 = vld [vmem:[%s2274_s1 + $0x78] sm:$0xff]  ;;  %1728 = vset.pattern.permute.xlu1 %v1810_v6  ;;  %1727 = vset.pattern.permute.xlu0 %v1810_v6  ;;  %v1634_v9 = vld [vmem:[%s2274_s1 + $0x30] sm:$0xff]  ;;  %v1608_v11 = vld [vmem:[%s2276_s3 + $0x60] sm:$0xf]  ;;  %s2293_s17 = smov (!%p354_p11, %s1456_s17), 31  ;;  %s2295_s16 = smov (!%p1967_p12, %s1453_s16), 7 }
  0x16   : > { %v1667_v3 = vld [vmem:[%s2276_s3 + $0x74] sm:$0xf0]  ;;  %v1618_v5 = vld [vmem:[%s2276_s3 + $0x78] sm:$0xf0]  ;;  %624 = vmatpush.bf16.msra.mxu0 %v1635_v0  ;;  %673 = vmatpush.bf16.msra.mxu1 %v1643_v1  ;;  %v1642_v10 = vld [vmem:[%s2274_s1 + $0x70] sm:$0xff]  ;;  %s2280_s20 = sshll.u32 %s2293_s17, 3 }
  0x17   : > { %v1617_v7 = vor.u32 %v1667_v3, %v1616_v2  ;;  %v1621_v8 = vor.u32 %v1666_v4, %v1618_v5  ;;  %v1665_v12 = vld [vmem:[%s2276_s3 + $0x64] sm:$0xf0]  ;;  %v1664_v13 = vld [vmem:[%s2276_s3 + $0x64] sm:$0xf]  ;;  %v1610_v14 = vld [vmem:[%s2276_s3 + $0x68] sm:$0xf0]  ;;  %1729 = vset.pattern.permute.xlu2 %v1810_v6  ;;  %s1976_s14 = scalar_lea.vmem %s2278_s5, %s2280_s20 }
  0x18   : > { %v1609_v15 = vor.u32 %v1665_v12, %v1608_v11  ;;  %v1613_v16 = vor.u32 %v1664_v13, %v1610_v14  ;;  %v1600_v17 = vld [vmem:[%s2276_s3 + $0x50] sm:$0xf]  ;;  %v1663_v18 = vld [vmem:[%s2276_s3 + $0x54] sm:$0xf0]  ;;  %v1662_v19 = vld [vmem:[%s2276_s3 + $0x54] sm:$0xf] }
  0x19   : > { %917 = vmatpush.bf16.msra.mxu2 %v1617_v7  ;;  %966 = vmatpush.bf16.msra.mxu3 %v1621_v8  ;;  %v1602_v20 = vld [vmem:[%s2276_s3 + $0x58] sm:$0xf0]  ;;  %v1633_v21 = vld [vmem:[%s2274_s1 + $0x28] sm:$0xff]  ;;  %v1592_v23 = vld [vmem:[%s2276_s3 + $0x40] sm:$0xf]  ;;  %v1601_v28 = vor.u32 %v1663_v18, %v1600_v17  ;;  %s1627_s18 = sshll.u32 %s2295_s16, 4 }
  0x1a   : > { %625 = vmatpush.bf16.msra.mxu0 %v1634_v9  ;;  %674 = vmatpush.bf16.msra.mxu1 %v1642_v10  ;;  %v1641_v22 = vld [vmem:[%s2274_s1 + $0x68] sm:$0xff]  ;;  %v1660_v25 = vld [vmem:[%s2276_s3 + $0x44] sm:$0xf]  ;;  %v1017_v26 = vld [vmem:[%s1976_s14 + $0x10] sm:$0xff]  ;;  %v1605_v29 = vor.u32 %v1662_v19, %v1602_v20  ;;  %s2041_s27 = scalar_lea.vmem %s2273_s0, %s1627_s18  ;;  %s1457_s13 = sshll.u32 %s2293_s17, 2 }
  0x1b   : > { %v1661_v24 = vld [vmem:[%s2276_s3 + $0x44] sm:$0xf0]  ;;  %v1015_v27 = vld [vmem:[%s1976_s14] sm:$0xff]  ;;  %v1594_v30 = vld [vmem:[%s2276_s3 + $0x48] sm:$0xf0]  ;;  %vm1033_vm0 = vcmp.gt.f32.partialorder %v1017_v26, 0.0  ;;  %s2113_s11 = scalar_lea.vmem %s2275_s2, %s1457_s13  ;;  %s1315_s13 = scalar_lea.hbm %s2279_s6, %s1668_s12 }
  0x1c   : > { %vm1031_vm1 = vcmp.gt.f32.partialorder %v1015_v27, 0.0  ;;  %v1018_v31 = vld [vmem:[%s1976_s14 + $0x18] sm:$0xff]  ;;  %v1016_v32 = vld [vmem:[%s1976_s14 + $0x8] sm:$0xff]  ;;  %v1049_v33 = vsel %vm1033_vm0, 1, %v1810_v6  ;;  %v1632_v35 = vld [vmem:[%s2274_s1 + $0x20] sm:$0xff]  ;;  %v1593_v37 = vor.u32 %v1661_v24, %v1592_v23  ;;  %v1597_v38 = vor.u32 %v1660_v25, %v1594_v30  ;;  %s2284_s28 = sshll.u32 %s2293_s17, 3 }
  0x1d   : > { %918 = vmatpush.bf16.msra.mxu2 %v1609_v15  ;;  %967 = vmatpush.bf16.msra.mxu3 %v1613_v16  ;;  %v1047_v34 = vsel %vm1031_vm1, 1, %v1810_v6  ;;  %v1640_v36 = vld [vmem:[%s2274_s1 + $0x60] sm:$0xff]  ;;  %vm1034_vm2 = vcmp.gt.f32.partialorder %v1018_v31, 0.0  ;;  %vm1032_vm3 = vcmp.gt.f32.partialorder %v1016_v32, 0.0  ;;  %v1584_v39 = vld [vmem:[%s2276_s3 + $0x30] sm:$0xf]  ;;  %s2136_s8 = scalar_lea.vmem %s2277_s4, %s2284_s28 }
  0x1e   : > { %626 = vmatpush.bf16.msra.mxu0 %v1633_v21  ;;  %675 = vmatpush.bf16.msra.mxu1 %v1641_v22  ;;  %v1659_v40 = vld [vmem:[%s2276_s3 + $0x34] sm:$0xf0]  ;;  %v1658_v41 = vld [vmem:[%s2276_s3 + $0x34] sm:$0xf]  ;;  %v1586_v42 = vld [vmem:[%s2276_s3 + $0x38] sm:$0xf0] }
  0x1f   : > { %1070 = vperm.xlu1 %1728, %v1049_v33   ;;  %1064 = vperm.xlu0 %1727, %v1047_v34   ;;  %v1631_v43 = vld [vmem:[%s2274_s1 + $0x18] sm:$0xff]  ;;  %v1050_v45 = vsel %vm1034_vm2, 1, %v1810_v6  ;;  %v1048_v46 = vsel %vm1032_vm3, 1, %v1810_v6  ;;  %v1585_v47 = vor.u32 %v1659_v40, %v1584_v39  ;;  %v1589_v48 = vor.u32 %v1658_v41, %v1586_v42  ;;  %v1576_v49 = vld [vmem:[%s2276_s3 + $0x20] sm:$0xf]  ;;  %v1021_v54 = vld [vmem:[%s1976_s14 + $0x30] sm:$0xff] }
  0x20   : > { %v1639_v44 = vld [vmem:[%s2274_s1 + $0x58] sm:$0xff]  ;;  %v1657_v50 = vld [vmem:[%s2276_s3 + $0x24] sm:$0xf0]  ;;  %v1656_v51 = vld [vmem:[%s2276_s3 + $0x24] sm:$0xf]  ;;  %vm1037_vm5 = vcmp.gt.f32.partialorder %v1021_v54, 0.0 }
  0x21   : > { %919 = vmatpush.bf16.msra.mxu2 %v1601_v28  ;;  %968 = vmatpush.bf16.msra.mxu3 %v1605_v29  ;;  %v1578_v52 = vld [vmem:[%s2276_s3 + $0x28] sm:$0xf0]  ;;  %v1022_v53 = vld [vmem:[%s1976_s14 + $0x38] sm:$0xff]  ;;  %v1630_v55 = vld [vmem:[%s2274_s1 + $0x10] sm:$0xff]  ;;  %v1577_v58 = vor.u32 %v1657_v50, %v1576_v49  ;;  %v1053_v11 = vsel %vm1037_vm5, 1, %v1810_v6  ;;  %s332_s17 = sand.u32 1, %s1792_s22  }
  0x22   : > { %627 = vmatpush.bf16.msra.mxu0 %v1632_v35  ;;  %676 = vmatpush.bf16.msra.mxu1 %v1640_v36  ;;  %v1638_v56 = vld [vmem:[%s2274_s1 + $0x50] sm:$0xff]  ;;  %v2055_v57 = vld [vmem:[%s2041_s27] sm:$0xff]  ;;  %v1581_v59 = vor.u32 %v1656_v51, %v1578_v52  ;;  %vm1038_vm4 = vcmp.gt.f32.partialorder %v1022_v53, 0.0  ;;  %v2061_v61 = vld [vmem:[%s2041_s27 + $0x8] sm:$0xff]  ;;  %s1318_s19 = sshll.u32 %s1315_s13, 4  ;;  %s1304_s24 = scalar_lea.sflag [#allocation4], %s332_s17  ;;  %s1319_s19 = int_to_ptr.hbm [resolvable:$true] %s1318_s19 }
  0x23   : > { %v1568_v60 = vld [vmem:[%s2276_s3 + $0x10] sm:$0xf]  ;;  %v1019_v62 = vld [vmem:[%s1976_s14 + $0x20] sm:$0xff]  ;;  %v1655_v63 = vld [vmem:[%s2276_s3 + $0x14] sm:$0xf0]  ;;  %v416_v2 = vunpack.c.0.s8 %v2055_v57  ;;  %v418_v3 = vunpack.c.1.s8 %v2055_v57  ;;  %v417_v4 = vunpack.c.0.s8 %v2061_v61  ;;  %v419_v5 = vunpack.c.1.s8 %v2061_v61 }
  0x24   : > { %v1654_v0 = vld [vmem:[%s2276_s3 + $0x14] sm:$0xf]  ;;  %v1570_v1 = vld [vmem:[%s2276_s3 + $0x18] sm:$0xf0]  ;;  %v1629_v7 = vld [vmem:[%s2274_s1 + $0x8] sm:$0xff]  ;;  %vm1035_vm6 = vcmp.gt.f32.partialorder %v1019_v62, 0.0  ;;  %v1569_v12 = vor.u32 %v1655_v63, %v1568_v60  ;;  %v422_v39 = vunpack.c.3.s8 %v2055_v57  ;;  %v421_v40 = vunpack.c.2.s8 %v2061_v61 }
  0x25   : > { %920 = vmatpush.bf16.msra.mxu2 %v1593_v37  ;;  %969 = vmatpush.bf16.msra.mxu3 %v1597_v38  ;;  %v1637_v8 = vld [vmem:[%s2274_s1 + $0x48] sm:$0xff]  ;;  %v1051_v9 = vsel %vm1035_vm6, 1, %v1810_v6  ;;  %v1054_v10 = vsel %vm1038_vm4, 1, %v1810_v6  ;;  %v1573_v13 = vor.u32 %v1654_v0, %v1570_v1  ;;  %v1628_v14 = vld [vmem:[%s2274_s1] sm:$0xff]  ;;  %v448_v19 = vcvt.s32.f32 %v416_v2  ;;  %v1025_v25 = vld [vmem:[%s1976_s14 + $0x50] sm:$0xff] }
  0x26   : > { %628 = vmatpush.bf16.msra.mxu0 %v1631_v43  ;;  %677 = vmatpush.bf16.msra.mxu1 %v1639_v44  ;;  %v1560_v15 = vld [vmem:[%s2276_s3] sm:$0xf]  ;;  %v1653_v16 = vld [vmem:[%s2276_s3 + $0x4] sm:$0xf0]  ;;  %v1652_v17 = vld [vmem:[%s2276_s3 + $0x4] sm:$0xf]  ;;  %v450_v20 = vcvt.s32.f32 %v418_v3  ;;  %v449_v21 = vcvt.s32.f32 %v417_v4  ;;  %v451_v22 = vcvt.s32.f32 %v419_v5  ;;  %v420_v38 = vunpack.c.2.s8 %v2055_v57 }
  0x27   : > { %1073 = vperm.xlu1 %1728, %v1050_v45   ;;  %1067 = vperm.xlu0 %1727, %v1048_v46   ;;  %v1562_v18 = vld [vmem:[%s2276_s3 + $0x8] sm:$0xf0]  ;;  %v1636_v24 = vld [vmem:[%s2274_s1 + $0x40] sm:$0xff]  ;;  %v1561_v27 = vor.u32 %v1653_v16, %v1560_v15  ;;  %vm1041_vm8 = vcmp.gt.f32.partialorder %v1025_v25, 0.0  ;;  %v423_v41 = vunpack.c.3.s8 %v2061_v61  ;;  %v454_v46 = vcvt.s32.f32 %v422_v39  ;;  %v1026_v49 = vld [vmem:[%s1976_s14 + $0x58] sm:$0xff] }
  0x28   : > { %1076 = vperm.xlu2 %1729, %v1051_v9   ;;  %v1020_v23 = vld [vmem:[%s1976_s14 + $0x28] sm:$0xff]  ;;  %v1565_v28 = vor.u32 %v1652_v17, %v1562_v18  ;;  %v480_v29 = vpack.c.bf16 %v450_v20, %v448_v19  ;;  %v481_v30 = vpack.c.bf16 %v451_v22, %v449_v21  ;;  %v1057_v32 = vsel %vm1041_vm8, 1, %v1810_v6  ;;  %v1644_v34 = vld [vmem:[%s2113_s11] sm:$0xff]  ;;  %v1030_v50 = vld [vmem:[%s1976_s14 + $0x78] sm:$0xff] }
  0x29   : > { %921 = vmatpush.bf16.msra.mxu2 %v1585_v47  ;;  %970 = vmatpush.bf16.msra.mxu3 %v1589_v48  ;;  %v1024_v26 = vld [vmem:[%s1976_s14 + $0x48] sm:$0xff]  ;;  %vm1036_vm7 = vcmp.gt.f32.partialorder %v1020_v23, 0.0  ;;  %v1027_v36 = vld [vmem:[%s1976_s14 + $0x60] sm:$0xff]  ;;  %v452_v45 = vcvt.s32.f32 %v420_v38  ;;  %v453_v47 = vcvt.s32.f32 %v421_v40  ;;  %v455_v48 = vcvt.s32.f32 %v423_v41  ;;  %v1029_v57 = vld [vmem:[%s1976_s14 + $0x70] sm:$0xff] }
  0x2a   : > { %629 = vmatpush.bf16.msra.mxu0 %v1630_v55  ;;  %678 = vmatpush.bf16.msra.mxu1 %v1638_v56  ;;  %vm1040_vm9 = vcmp.gt.f32.partialorder %v1024_v26, 0.0  ;;  %v1052_v31 = vsel %vm1036_vm7, 1, %v1810_v6  ;;  %v1028_v35 = vld [vmem:[%s1976_s14 + $0x68] sm:$0xff]  ;;  %v1023_v37 = vld [vmem:[%s1976_s14 + $0x40] sm:$0xff]  ;;  %vm1043_vm11 = vcmp.gt.f32.partialorder %v1027_v36, 0.0  ;;  %vm1042_vm13 = vcmp.gt.f32.partialorder %v1026_v49, 0.0 }
  0x2b   : > { %v1056_v33 = vsel %vm1040_vm9, 1, %v1810_v6  ;;  %vm1044_vm10 = vcmp.gt.f32.partialorder %v1028_v35, 0.0  ;;  %vm1039_vm12 = vcmp.gt.f32.partialorder %v1023_v37, 0.0  ;;  %v1059_v44 = vsel %vm1043_vm11, 1, %v1810_v6  ;;  %v1159_v55 = vld [vmem:[%s2136_s8] sm:$0xff]  ;;  %v1645_v56 = vld [vmem:[%s2113_s11 + $0x8] sm:$0xff] }
  0x2c   : > { %v1055_v42 = vsel %vm1039_vm12, 1, %v1810_v6  ;;  %v1060_v43 = vsel %vm1044_vm10, 1, %v1810_v6  ;;  %vm1046_vm14 = vcmp.gt.f32.partialorder %v1030_v50, 0.0  ;;  %v482_v51 = vpack.c.bf16 %v454_v46, %v452_v45  ;;  %v1161_v1 = vld [vmem:[%s2136_s8 + $0x10] sm:$0xff]  ;;  %v1162_v2 = vld [vmem:[%s2136_s8 + $0x18] sm:$0xff]  ;;  %v1163_v17 = vld [vmem:[%s2136_s8 + $0x20] sm:$0xff] }
  0x2d   : > { %922 = vmatpush.bf16.msra.mxu2 %v1577_v58  ;;  %971 = vmatpush.bf16.msra.mxu3 %v1581_v59  ;;  %v483_v52 = vpack.c.bf16 %v455_v48, %v453_v47  ;;  %v1058_v53 = vsel %vm1042_vm13, 1, %v1810_v6  ;;  %v1062_v54 = vsel %vm1046_vm14, 1, %v1810_v6  ;;  %v410_v58 = vld [vmem:[%s2041_s27 + $0x10] sm:$0xff]  ;;  %v411_v59 = vld [vmem:[%s2041_s27 + $0x18] sm:$0xff]  ;;  %vm1045_vm15 = vcmp.gt.f32.partialorder %v1029_v57, 0.0  ;;  %v1167_v18 = vld [vmem:[%s2136_s8 + $0x40] sm:$0xff] }
  0x2e   : > { %630 = vmatpush.bf16.msra.mxu0 %v1629_v7  ;;  %679 = vmatpush.bf16.msra.mxu1 %v1637_v8  ;;  %v424_v60 = vunpack.c.0.s8 %v410_v58  ;;  %v426_v61 = vunpack.c.1.s8 %v410_v58  ;;  %v425_v62 = vunpack.c.0.s8 %v411_v59  ;;  %v427_v63 = vunpack.c.1.s8 %v411_v59  ;;  %v1168_v19 = vld [vmem:[%s2136_s8 + $0x48] sm:$0xff]  ;;  %v1166_v26 = vld [vmem:[%s2136_s8 + $0x38] sm:$0xff]  ;;  %v1169_v36 = vld [vmem:[%s2136_s8 + $0x50] sm:$0xff]  ;;  %s1452_s14 = sshll.u32 %s332_s17, 7 }
  0x2f   : > { %1085 = vperm.xlu1 %1728, %v1054_v10   ;;  %1082 = vperm.xlu0 %1727, %v1053_v11   ;;  %v1061_v0 = vsel %vm1045_vm15, 1, %v1810_v6  ;;  %v1160_v10 = vld [vmem:[%s2136_s8 + $0x8] sm:$0xff]  ;;  %v428_v6 = vunpack.c.2.s8 %v410_v58  ;;  %v429_v15 = vunpack.c.2.s8 %v411_v59  ;;  %v431_v16 = vunpack.c.3.s8 %v411_v59  ;;  %v1173_v37 = vld [vmem:[%s2136_s8 + $0x70] sm:$0xff]  ;;  %v1174_v38 = vld [vmem:[%s2136_s8 + $0x78] sm:$0xff] }
  0x30   : > { %1079 = vperm.xlu2 %1729, %v1052_v31   ;;  %v456_v3 = vcvt.s32.f32 %v424_v60  ;;  %v458_v4 = vcvt.s32.f32 %v426_v61  ;;  %v457_v5 = vcvt.s32.f32 %v425_v62  ;;  %v459_v7 = vcvt.s32.f32 %v427_v63  ;;  %v1164_v11 = vld [vmem:[%s2136_s8 + $0x28] sm:$0xff]  ;;  %v1648_v46 = vld [vmem:[%s2113_s11 + $0x20] sm:$0xff]  ;;  %v415_v59 = vld [vmem:[%s2041_s27 + $0x38] sm:$0xff] }
  0x31   : > { %923 = vmatpush.bf16.msra.mxu2 %v1569_v12  ;;  %972 = vmatpush.bf16.msra.mxu3 %v1573_v13  ;;  %v1165_v12 = vld [vmem:[%s2136_s8 + $0x30] sm:$0xff]  ;;  %v460_v20 = vcvt.s32.f32 %v428_v6  ;;  %v461_v22 = vcvt.s32.f32 %v429_v15  ;;  %v463_v23 = vcvt.s32.f32 %v431_v16  ;;  %v413_v31 = vld [vmem:[%s2041_s27 + $0x28] sm:$0xff]  ;;  %v441_v62 = vunpack.c.0.s8 %v415_v59 }
  0x32   : > { %631 = vmatpush.bf16.msra.mxu0 %v1628_v14  ;;  %680 = vmatpush.bf16.msra.mxu1 %v1636_v24  ;;  %v484_v8 = vpack.c.bf16 %v458_v4, %v456_v3  ;;  %v485_v9 = vpack.c.bf16 %v459_v7, %v457_v5  ;;  %v1646_v13 = vld [vmem:[%s2113_s11 + $0x10] sm:$0xff]  ;;  %v430_v14 = vunpack.c.3.s8 %v410_v58  ;;  %v435_v35 = vunpack.c.1.s8 %v413_v31  ;;  %v1172_v45 = vld [vmem:[%s2136_s8 + $0x68] sm:$0xff] }
  0x33   : > { %v487_v25 = vpack.c.bf16 %v463_v23, %v461_v22  ;;  %v437_v49 = vunpack.c.2.s8 %v413_v31  ;;  %v439_v50 = vunpack.c.3.s8 %v413_v31  ;;  %v1649_v57 = vld [vmem:[%s2113_s11 + $0x28] sm:$0xff]  ;;  %v414_v58 = vld [vmem:[%s2041_s27 + $0x30] sm:$0xff]  ;;  %v443_v63 = vunpack.c.1.s8 %v415_v59 }
  0x34   : > { %v462_v21 = vcvt.s32.f32 %v430_v14  ;;  %v440_v60 = vunpack.c.0.s8 %v414_v58  ;;  %v442_v61 = vunpack.c.1.s8 %v414_v58  ;;  %v444_v6 = vunpack.c.2.s8 %v414_v58 }
  0x35   : > { %924 = vmatpush.bf16.msra.mxu2 %v1561_v27  ;;  %973 = vmatpush.bf16.msra.mxu3 %v1565_v28  ;;  %v1170_v27 = vld [vmem:[%s2136_s8 + $0x58] sm:$0xff]  ;;  %v1171_v28 = vld [vmem:[%s2136_s8 + $0x60] sm:$0xff]  ;;  %v475_v3 = vcvt.s32.f32 %v443_v63  ;;  %v446_v14 = vunpack.c.3.s8 %v414_v58  ;;  %v445_v15 = vunpack.c.2.s8 %v415_v59  ;;  %v447_v16 = vunpack.c.3.s8 %v415_v59  ;;  %s1750_s8 = scalar_lea.hbm %s2279_s6, 256 }
  0x36   : > { %632 = vmatmul.bf16.vlgmr.msra.gmra.mxu0 %v480_v29  ;;  %681 = vmatmul.bf16.vlgmr.msra.gmra.mxu1 %v481_v30  ;;  %v486_v24 = vpack.c.bf16 %v462_v21, %v460_v20  ;;  %v1647_v29 = vld [vmem:[%s2113_s11 + $0x18] sm:$0xff]  ;;  %v412_v30 = vld [vmem:[%s2041_s27 + $0x20] sm:$0xff]  ;;  %s2202_s27 = scalar_lea.vmem [#allocation3], %s1452_s14 }
  0x37   : > { %1094 = vperm.xlu1 %1728, %v1057_v32   ;;  %1091 = vperm.xlu0 %1727, %v1056_v33   ;;  %v432_v32 = vunpack.c.0.s8 %v412_v30  ;;  %v434_v33 = vunpack.c.1.s8 %v412_v30  ;;  %v436_v47 = vunpack.c.2.s8 %v412_v30  ;;  %v438_v48 = vunpack.c.3.s8 %v412_v30  ;;  %s1316_s15 = sshll.u32 %s2202_s27, 4  ;;  %s1317_s15 = int_to_ptr.vmem [resolvable:$true] %s1316_s15 }
  0x38   : > { %925 = vmatmul.bf16.vlgmr.msra.gmra.mxu2 %v1644_v34  ;;  %974 = vmatmul.bf16.vlgmr.msra.gmra.mxu3 %v1644_v34  ;;  %v433_v34 = vunpack.c.0.s8 %v413_v31  ;;  %v479_v20 = vcvt.s32.f32 %v447_v16 }
  0x39   : > { %1088 = vperm.xlu2 %1729, %v1055_v42   ;;  %v464_v39 = vcvt.s32.f32 %v432_v32  ;;  %v466_v40 = vcvt.s32.f32 %v434_v33  ;;  %v467_v42 = vcvt.s32.f32 %v435_v35 }
  0x3a   : > { %v465_v41 = vcvt.s32.f32 %v433_v34 }
  0x3f   : > { %1103 = vperm.xlu1 %1728, %v1060_v43   ;;  %1100 = vperm.xlu0 %1727, %v1059_v44   ;;  %v488_v43 = vpack.c.bf16 %v466_v40, %v464_v39  ;;  %v489_v44 = vpack.c.bf16 %v467_v42, %v465_v41 }
  0x41   : > { %1097 = vperm.xlu2 %1729, %v1058_v53   ;;  %v469_v53 = vcvt.s32.f32 %v437_v49 }
  0x46   : > { %637 = vmatmul.bf16.gmra.mxu0 %v482_v51  ;;  %686 = vmatmul.bf16.gmra.mxu1 %v483_v52  ;;  %v468_v51 = vcvt.s32.f32 %v436_v47  ;;  %v470_v52 = vcvt.s32.f32 %v438_v48 }
  0x47   : > { %1109 = vperm.xlu0 %1727, %v1062_v54   ;;  %1177 = vperm.xlu1 %1728, %v1159_v55   ;;  %v471_v54 = vcvt.s32.f32 %v439_v50 }
  0x48   : > { %930 = vmatmul.bf16.gmra.mxu2 %v1645_v56  ;;  %979 = vmatmul.bf16.gmra.mxu3 %v1645_v56  ;;  %v490_v55 = vpack.c.bf16 %v470_v52, %v468_v51 }
  0x49   : > { %1106 = vperm.xlu2 %1729, %v1061_v0   ;;  %v491_v56 = vpack.c.bf16 %v471_v54, %v469_v53  ;;  %v472_v0 = vcvt.s32.f32 %v440_v60 }
  0x4f   : > { %1187 = vperm.xlu0 %1727, %v1161_v1   ;;  %1192 = vperm.xlu1 %1728, %v1162_v2   ;;  %v474_v1 = vcvt.s32.f32 %v442_v61  ;;  %v473_v2 = vcvt.s32.f32 %v441_v62 }
  0x51   : > { %1182 = vperm.xlu2 %1729, %v1160_v10   ;;  %v1650_v10 = vld [vmem:[%s2113_s11 + $0x30] sm:$0xff] }
  0x56   : > { %642 = vmatmul.bf16.gmra.mxu0 %v484_v8  ;;  %691 = vmatmul.bf16.gmra.mxu1 %v485_v9  ;;  %v492_v8 = vpack.c.bf16 %v474_v1, %v472_v0  ;;  %v493_v9 = vpack.c.bf16 %v475_v3, %v473_v2 }
  0x57   : > { %1202 = vperm.xlu0 %1727, %v1164_v11   ;;  %1207 = vperm.xlu1 %1728, %v1165_v12  }
  0x58   : > { %935 = vmatmul.bf16.gmra.mxu2 %v1646_v13  ;;  %984 = vmatmul.bf16.gmra.mxu3 %v1646_v13 }
  0x59   : > { %1197 = vperm.xlu2 %1729, %v1163_v17   ;;  %v476_v17 = vcvt.s32.f32 %v444_v6 }
  0x5f   : > { %1217 = vperm.xlu0 %1727, %v1167_v18   ;;  %1222 = vperm.xlu1 %1728, %v1168_v19   ;;  %v478_v18 = vcvt.s32.f32 %v446_v14  ;;  %v477_v19 = vcvt.s32.f32 %v445_v15 }
  0x61   : > { %1212 = vperm.xlu2 %1729, %v1166_v26   ;;  %v494_v23 = vpack.c.bf16 %v478_v18, %v476_v17  ;;  %v1651_v26 = vld [vmem:[%s2113_s11 + $0x38] sm:$0xff]  ;;  %s1744_s11 = sshra.s32 %s1319_s19, 4  ;;  %s1745_s11 = int_to_ptr.hbm [resolvable:$true] %s1744_s11 }
  0x62   : > { %s1746_s28 = scalar_lea.hbm %s1745_s11, 128  ;;  %p1751_p2 = scmp.lt.s32.totalorder %s1745_s11, %s2279_s6 }
  0x63   : > { %p1747_p13 = scmp.ne.s32.totalorder %s1745_s11, %s1746_s28  ;;  %p1752_p3 = scmp.lt.s32.totalorder %s1750_s8, %s1746_s28 }
  0x65   : > { %p1748_p0 = pnand %p1747_p13, %p1888_p4  ;;  %p1753_p5 = por %p1752_p3, %p1751_p2 }
  0x66   : > { %647 = vmatmul.bf16.gmra.mxu0 %v486_v24  ;;  %696 = vmatmul.bf16.gmra.mxu1 %v487_v25  ;;  %v495_v24 = vpack.c.bf16 %v479_v20, %v477_v19 }
  0x67   : > { %1232 = vperm.xlu0 %1727, %v1170_v27   ;;  %1237 = vperm.xlu1 %1728, %v1171_v28   ;;  %p1749_p1 = pneg %p1748_p0 }
  0x68   : > { %940 = vmatmul.bf16.gmra.mxu2 %v1647_v29  ;;  %989 = vmatmul.bf16.gmra.mxu3 %v1647_v29 }
  0x69   : > { %1227 = vperm.xlu2 %1729, %v1169_v36   ;;  %p1754_p6 = pnand %p1753_p5, %p1749_p1 }
  0x6f   : > { %1247 = vperm.xlu0 %1727, %v1173_v37   ;;  %1252 = vperm.xlu1 %1728, %v1174_v38  }
  0x71   : > { %1242 = vperm.xlu2 %1729, %v1172_v45  }
  0x76   : > { %652 = vmatmul.bf16.gmra.mxu0 %v488_v43  ;;  %701 = vmatmul.bf16.gmra.mxu1 %v489_v44 }
  0x78   : > { %945 = vmatmul.bf16.gmra.mxu2 %v1648_v46  ;;  %994 = vmatmul.bf16.gmra.mxu3 %v1648_v46 }
  0x82   : > { %v2169_v4 = vpop.permute.xlu2 %1076 }
  0x83   : > { %vm1115_vm4 = vcmp.eq.s32.totalorder %v2169_v4, 1 }
  0x86   : > { %657 = vmatmul.bf16.gmra.mxu0 %v490_v55  ;;  %706 = vmatmul.bf16.gmra.mxu1 %v491_v56 }
  0x88   : > { %950 = vmatmul.bf16.gmra.mxu2 %v1649_v57  ;;  %999 = vmatmul.bf16.gmra.mxu3 %v1649_v57 }
  0x8a   : > { %v2174_v11 = vpop.permute.xlu2 %1079 }
  0x8b   : > { %vm1116_vm5 = vcmp.eq.s32.totalorder %v2174_v11, 1 }
  0x91   : > { %v2171_v5 = vpop.permute.xlu1 %1070  ;;  %v1065_v7 = vpop.permute.xlu0 %1064 }
  0x92   : > { %vm1111_vm0 = vcmp.eq.s32.totalorder %v1065_v7, 1  ;;  %vm1113_vm2 = vcmp.eq.s32.totalorder %v2171_v5, 1 }
  0x93   : > { %v2182_v25 = vpop.permute.xlu2 %1088 }
  0x94   : > { %vm1119_vm8 = vcmp.eq.s32.totalorder %v2182_v25, 1 }
  0x96   : > { %662 = vmatmul.bf16.gmra.mxu0 %v492_v8  ;;  %711 = vmatmul.bf16.gmra.mxu1 %v493_v9 }
  0x98   : > { %955 = vmatmul.bf16.gmra.mxu2 %v1650_v10  ;;  %1004 = vmatmul.bf16.gmra.mxu3 %v1650_v10 }
  0x99   : > { %v2176_v12 = vpop.permute.xlu1 %1073  ;;  %v1068_v13 = vpop.permute.xlu0 %1067 }
  0x9a   : > { %vm1112_vm1 = vcmp.eq.s32.totalorder %v1068_v13, 1  ;;  %vm1114_vm3 = vcmp.eq.s32.totalorder %v2176_v12, 1 }
  0x9b   : > { %v2189_v29 = vpop.permute.xlu2 %1097 }
  0x9c   : > { %vm1122_vm11 = vcmp.eq.s32.totalorder %v2189_v29, 1 }
  0xa1   : > { %v2178_v21 = vpop.permute.xlu1 %1085  ;;  %v2180_v22 = vpop.permute.xlu0 %1082 }
  0xa2   : > { %vm1117_vm6 = vcmp.eq.s32.totalorder %v2180_v22, 1  ;;  %vm1118_vm7 = vcmp.eq.s32.totalorder %v2178_v21, 1 }
  0xa3   : > { %v2195_v35 = vpop.permute.xlu2 %1106 }
  0xa4   : > { %vm1125_vm14 = vcmp.eq.s32.totalorder %v2195_v35, 1 }
  0xa6   : > { %667 = vmatmul.bf16.gmra.mxu0 %v494_v23  ;;  %716 = vmatmul.bf16.gmra.mxu1 %v495_v24 }
  0xa8   : > { %960 = vmatmul.bf16.gmra.mxu2 %v1651_v26  ;;  %1009 = vmatmul.bf16.gmra.mxu3 %v1651_v26 }
  0xa9   : > { %v2185_v27 = vpop.permute.xlu1 %1094  ;;  %v2187_v28 = vpop.permute.xlu0 %1091 }
  0xaa   : > { %vm1120_vm9 = vcmp.eq.s32.totalorder %v2187_v28, 1  ;;  %vm1121_vm10 = vcmp.eq.s32.totalorder %v2185_v27, 1 }
  0xab   : > { %v1183_v46 = vpop.permute.xlu2 %1182 }
  0xb1   : > { %v2191_v30 = vpop.permute.xlu1 %1103  ;;  %v2193_v33 = vpop.permute.xlu0 %1100 }
  0xb2   : > { %vm1123_vm12 = vcmp.eq.s32.totalorder %v2193_v33, 1  ;;  %vm1124_vm13 = vcmp.eq.s32.totalorder %v2191_v30, 1 }
  0xb3   : > { %v633_v31 = vpop.f32.mrf.mxu0  ;;  %v682_v32 = vpop.f32.mrf.mxu1 }
  0xb4   : > { %v683_v34 = vadd.f32 %v682_v32, %v633_v31  ;;  %v1198_v13 = vpop.permute.xlu2 %1197 }
  0xb9   : > { %v1178_v36 = vpop.permute.xlu1 %1177  ;;  %v2200_v44 = vpop.permute.xlu0 %1109 }
  0xba   : > { %v1255_v37 = vmul.f32 %v1178_v36, %v683_v34  ;;  %vm1126_vm15 = vcmp.eq.s32.totalorder %v2200_v44, 1 }
  0xbb   : > { %v635_v38 = vpop.f32.mrf.mxu0  ;;  %v684_v39 = vpop.f32.mrf.mxu1 }
  0xbc   : > { %v926_v40 = vpop.f32.mrf.mxu2  ;;  %v975_v41 = vpop.f32.mrf.mxu3  ;;  %v685_v45 = vadd.f32 %v684_v39, %v635_v38 }
  0xbd   : > { %v1127_v42 = vsel %vm1111_vm0, %v926_v40, %v975_v41 }
  0xbe   : > { %v1271_v43 = vadd.f32 %v1255_v37, %v1127_v42  ;;  %v1256_v49 = vmul.f32 %v1183_v46, %v685_v45  ;;  %v1213_v46 = vpop.permute.xlu2 %1212 }
  0xc0   : > { %1287 = vst [vmem:[%s2202_s27] sm:$0xff] %v1271_v43 }
  0xc1   : > { %v1188_v55 = vpop.permute.xlu0 %1187  ;;  %v1193_v0 = vpop.permute.xlu1 %1192 }
  0xc3   : > { %v638_v47 = vpop.f32.mrf.mxu0  ;;  %v687_v48 = vpop.f32.mrf.mxu1 }
  0xc4   : > { %v928_v50 = vpop.f32.mrf.mxu2  ;;  %v977_v51 = vpop.f32.mrf.mxu3  ;;  %v688_v54 = vadd.f32 %v687_v48, %v638_v47 }
  0xc5   : > { %v1128_v52 = vsel %vm1112_vm1, %v928_v50, %v977_v51 }
  0xc6   : > { %v1272_v53 = vadd.f32 %v1256_v49, %v1128_v52  ;;  %v1257_v56 = vmul.f32 %v1188_v55, %v688_v54 }
  0xc8   : > { %1288 = vst [vmem:[%s2202_s27 + $0x8] sm:$0xff] %v1272_v53 }
  0xc9   : > { %v1203_v20 = vpop.permute.xlu0 %1202  ;;  %v1208_v37 = vpop.permute.xlu1 %1207 }
  0xcb   : > { %v640_v57 = vpop.f32.mrf.mxu0  ;;  %v689_v58 = vpop.f32.mrf.mxu1 }
  0xcc   : > { %v931_v59 = vpop.f32.mrf.mxu2  ;;  %v980_v60 = vpop.f32.mrf.mxu3  ;;  %v690_v63 = vadd.f32 %v689_v58, %v640_v57 }
  0xcd   : > { %v1129_v61 = vsel %vm1113_vm2, %v931_v59, %v980_v60 }
  0xce   : > { %v1273_v62 = vadd.f32 %v1257_v56, %v1129_v61  ;;  %v1258_v3 = vmul.f32 %v1193_v0, %v690_v63 }
  0xd0   : > { %1289 = vst [vmem:[%s2202_s27 + $0x10] sm:$0xff] %v1273_v62 }
  0xd1   : > { %v1218_v54 = vpop.permute.xlu0 %1217  ;;  %v1223_v62 = vpop.permute.xlu1 %1222 }
  0xd3   : > { %v643_v1 = vpop.f32.mrf.mxu0  ;;  %v692_v2 = vpop.f32.mrf.mxu1 }
  0xd4   : > { %v933_v7 = vpop.f32.mrf.mxu2  ;;  %v982_v8 = vpop.f32.mrf.mxu3  ;;  %v693_v10 = vadd.f32 %v692_v2, %v643_v1 }
  0xd5   : > { %v1130_v5 = vsel %vm1114_vm3, %v933_v7, %v982_v8 }
  0xd6   : > { %v1274_v9 = vadd.f32 %v1258_v3, %v1130_v5  ;;  %v1259_v6 = vmul.f32 %v1198_v13, %v693_v10  ;;  %v1228_v5 = vpop.permute.xlu2 %1227 }
  0xd8   : > { %1290 = vst [vmem:[%s2202_s27 + $0x18] sm:$0xff] %v1274_v9 }
  0xdb   : > { %v645_v14 = vpop.f32.mrf.mxu0  ;;  %v694_v15 = vpop.f32.mrf.mxu1 }
  0xdc   : > { %v936_v16 = vpop.f32.mrf.mxu2  ;;  %v985_v12 = vpop.f32.mrf.mxu3  ;;  %v695_v19 = vadd.f32 %v694_v15, %v645_v14 }
  0xdd   : > { %v1131_v17 = vsel %vm1115_vm4, %v936_v16, %v985_v12  ;;  %v1233_v12 = vpop.permute.xlu0 %1232 }
  0xde   : > { %v1275_v18 = vadd.f32 %v1259_v6, %v1131_v17  ;;  %v1260_v26 = vmul.f32 %v1203_v20, %v695_v19 }
  0xe0   : > { %1291 = vst [vmem:[%s2202_s27 + $0x20] sm:$0xff] %v1275_v18 }
  0xe3   : > { %v648_v23 = vpop.f32.mrf.mxu0  ;;  %v697_v24 = vpop.f32.mrf.mxu1 }
  0xe4   : > { %v938_v31 = vpop.f32.mrf.mxu2  ;;  %v987_v32 = vpop.f32.mrf.mxu3  ;;  %v698_v36 = vadd.f32 %v697_v24, %v648_v23 }
  0xe5   : > { %v1132_v4 = vsel %vm1116_vm5, %v938_v31, %v987_v32  ;;  %v1238_v31 = vpop.permute.xlu1 %1237 }
  0xe6   : > { %v1276_v34 = vadd.f32 %v1260_v26, %v1132_v4  ;;  %v1261_v40 = vmul.f32 %v1208_v37, %v698_v36 }
  0xe8   : > { %1292 = vst [vmem:[%s2202_s27 + $0x28] sm:$0xff] %v1276_v34 }
  0xeb   : > { %v650_v38 = vpop.f32.mrf.mxu0  ;;  %v699_v39 = vpop.f32.mrf.mxu1 }
  0xec   : > { %v941_v41 = vpop.f32.mrf.mxu2  ;;  %v990_v11 = vpop.f32.mrf.mxu3  ;;  %v700_v45 = vadd.f32 %v699_v39, %v650_v38 }
  0xed   : > { %v1133_v42 = vsel %vm1117_vm6, %v941_v41, %v990_v11  ;;  %v1253_v35 = vpop.permute.xlu1 %1252 }
  0xee   : > { %v1277_v43 = vadd.f32 %v1261_v40, %v1133_v42  ;;  %v1262_v49 = vmul.f32 %v1213_v46, %v700_v45  ;;  %v1243_v40 = vpop.permute.xlu2 %1242 }
  0xf0   : > { %1293 = vst [vmem:[%s2202_s27 + $0x30] sm:$0xff] %v1277_v43 }
  0xf3   : > { %v653_v47 = vpop.f32.mrf.mxu0  ;;  %v702_v48 = vpop.f32.mrf.mxu1 }
  0xf4   : > { %v943_v50 = vpop.f32.mrf.mxu2  ;;  %v992_v51 = vpop.f32.mrf.mxu3  ;;  %v703_v22 = vadd.f32 %v702_v48, %v653_v47 }
  0xf5   : > { %v1134_v52 = vsel %vm1118_vm7, %v943_v50, %v992_v51  ;;  %v1248_v48 = vpop.permute.xlu0 %1247 }
  0xf6   : > { %v1278_v53 = vadd.f32 %v1262_v49, %v1134_v52  ;;  %v1263_v57 = vmul.f32 %v1218_v54, %v703_v22 }
  0xf8   : > { %1294 = vst [vmem:[%s2202_s27 + $0x38] sm:$0xff] %v1278_v53 }
  0xfb   : > { %v655_v55 = vpop.f32.mrf.mxu0  ;;  %v704_v56 = vpop.f32.mrf.mxu1 }
  0xfc   : > { %v946_v58 = vpop.f32.mrf.mxu2  ;;  %v995_v59 = vpop.f32.mrf.mxu3  ;;  %v705_v21 = vadd.f32 %v704_v56, %v655_v55 }
  0xfd   : > { %v1135_v60 = vsel %vm1119_vm8, %v946_v58, %v995_v59 }
  0xfe   : > { %v1279_v61 = vadd.f32 %v1263_v57, %v1135_v60  ;;  %v1264_v1 = vmul.f32 %v1223_v62, %v705_v21 }
 0x100   : > { %1295 = vst [vmem:[%s2202_s27 + $0x40] sm:$0xff] %v1279_v61 }
 0x103   : > { %v658_v63 = vpop.f32.mrf.mxu0  ;;  %v707_v0 = vpop.f32.mrf.mxu1 }
 0x104   : > { %v948_v2 = vpop.f32.mrf.mxu2  ;;  %v997_v3 = vpop.f32.mrf.mxu3  ;;  %v708_v25 = vadd.f32 %v707_v0, %v658_v63 }
 0x105   : > { %v1136_v7 = vsel %vm1120_vm9, %v948_v2, %v997_v3 }
 0x106   : > { %v1280_v8 = vadd.f32 %v1264_v1, %v1136_v7  ;;  %v1265_v13 = vmul.f32 %v1228_v5, %v708_v25 }
 0x108   : > { %1296 = vst [vmem:[%s2202_s27 + $0x48] sm:$0xff] %v1280_v8 }
 0x10b   : > { %v660_v9 = vpop.f32.mrf.mxu0  ;;  %v709_v10 = vpop.f32.mrf.mxu1 }
 0x10c   : > { %v951_v6 = vpop.f32.mrf.mxu2  ;;  %v1000_v14 = vpop.f32.mrf.mxu3  ;;  %v710_v28 = vadd.f32 %v709_v10, %v660_v9 }
 0x10d   : > { %v1137_v15 = vsel %vm1121_vm10, %v951_v6, %v1000_v14 }
 0x10e   : > { %v1281_v16 = vadd.f32 %v1265_v13, %v1137_v15  ;;  %v1266_v19 = vmul.f32 %v1233_v12, %v710_v28 }
 0x110   : > { %1297 = vst [vmem:[%s2202_s27 + $0x50] sm:$0xff] %v1281_v16 }
 0x113   : > { %v663_v17 = vpop.f32.mrf.mxu0  ;;  %v712_v18 = vpop.f32.mrf.mxu1 }
 0x114   : > { %v953_v20 = vpop.f32.mrf.mxu2  ;;  %v1002_v23 = vpop.f32.mrf.mxu3  ;;  %v713_v27 = vadd.f32 %v712_v18, %v663_v17 }
 0x115   : > { %v1138_v24 = vsel %vm1122_vm11, %v953_v20, %v1002_v23 }
 0x116   : > { %v1282_v26 = vadd.f32 %v1266_v19, %v1138_v24  ;;  %v1267_v34 = vmul.f32 %v1238_v31, %v713_v27 }
 0x118   : > { %1298 = vst [vmem:[%s2202_s27 + $0x58] sm:$0xff] %v1282_v26 }
 0x11b   : > { %v665_v32 = vpop.f32.mrf.mxu0  ;;  %v714_v4 = vpop.f32.mrf.mxu1 }
 0x11c   : > { %v956_v36 = vpop.f32.mrf.mxu2  ;;  %v1005_v37 = vpop.f32.mrf.mxu3  ;;  %v715_v29 = vadd.f32 %v714_v4, %v665_v32 }
 0x11d   : > { %v1139_v38 = vsel %vm1123_vm12, %v956_v36, %v1005_v37 }
 0x11e   : > { %v1283_v39 = vadd.f32 %v1267_v34, %v1139_v38  ;;  %v1268_v42 = vmul.f32 %v1243_v40, %v715_v29 }
 0x120   : > { %1299 = vst [vmem:[%s2202_s27 + $0x60] sm:$0xff] %v1283_v39 }
 0x123   : > { %v668_v41 = vpop.f32.mrf.mxu0  ;;  %v717_v11 = vpop.f32.mrf.mxu1 }
 0x124   : > { %v958_v43 = vpop.f32.mrf.mxu2  ;;  %v1007_v45 = vpop.f32.mrf.mxu3  ;;  %v718_v47 = vadd.f32 %v717_v11, %v668_v41 }
 0x125   : > { %v1140_v46 = vsel %vm1124_vm13, %v958_v43, %v1007_v45 }
 0x126   : > { %v1284_v33 = vadd.f32 %v1268_v42, %v1140_v46  ;;  %v1269_v49 = vmul.f32 %v1248_v48, %v718_v47 }
 0x128   : > { %1300 = vst [vmem:[%s2202_s27 + $0x68] sm:$0xff] %v1284_v33 }
 0x12b   : > { %v670_v53 = vpop.f32.mrf.mxu0  ;;  %v719_v22 = vpop.f32.mrf.mxu1 }
 0x12c   : > { %v961_v50 = vpop.f32.mrf.mxu2  ;;  %v1010_v51 = vpop.f32.mrf.mxu3  ;;  %v720_v54 = vadd.f32 %v719_v22, %v670_v53 }
 0x12d   : > { %v1141_v52 = vsel %vm1125_vm14, %v961_v50, %v1010_v51 }
 0x12e   : > { %v1285_v30 = vadd.f32 %v1269_v49, %v1141_v52  ;;  %v1270_v55 = vmul.f32 %v1253_v35, %v720_v54 }
 0x130   : > { %1301 = vst [vmem:[%s2202_s27 + $0x70] sm:$0xff] %v1285_v30 }
 0x134   : > { %v963_v56 = vpop.f32.mrf.mxu2  ;;  %v1012_v57 = vpop.f32.mrf.mxu3 }
 0x135   : > { %v1142_v58 = vsel %vm1126_vm15, %v963_v56, %v1012_v57 }
 0x136   : > { %v1286_v59 = vadd.f32 %v1270_v55, %v1142_v58 }
 0x138   : > { %1302 = vst [vmem:[%s2202_s27 + $0x78] sm:$0xff] %v1286_v59 }
 0x139   : > { %1757 = shalt.err (!%p1754_p6)
}
 0x13a   : > { %s1811_s17 = smov 128   ;;  %s1812_s27 = smov 8  }
 0x13b   : > { %1669 = dma.vmem_to_hbm [thread:$0]  (%p1888_p4), %s1317_s15, 2048, %s1319_s19, %s1304_s24, %s1811_s17, %s1811_s17, %s1812_s27  }
 0x13c PF: > { %p1675_p7 = scmp.ge.s32.totalorder %s1808_s26, 2  ;;  %s1333_s20 = sand.u32 1, %s1788_s21  }
 0x13d   : > { %s1334_s18 = scalar_lea.sflag [#allocation4], %s1333_s20 }
 0x13e   : > { %p1672_p9 = pnand %p1675_p7, %p1895_p8 }
 0x140   : > { %p1673_p10 = pneg %p1672_p9 }
 0x142   : > { %1783 = dma.done.wait (%p1673_p10), %s1334_s18, 2048  }
 0x143   : > { %1785 = vsyncadd (%p1673_p10), %s1334_s18, 4294965248  ;;  %s19_s26 = sadd.s32 1, %s1808_s26   ;;  %s2285_s21 = smov %s1792_s22 }
 0x144   : > { %p16_p11 = scmp.ge.s32.totalorder %s19_s26, 4   ;;  %s2286_s22 = smov %s1796_s23 }
 0x145   : > { %s2287_s23 = smov %s1901_s10  ;;  %s2288_s24 = smov %s1804_s25 }
 0x146   : > { %s2289_s25 = smov %s2291_s29  ;;  %18 = sbr.rel (!%p16_p11) target bundleno = 4 (0x4), region = 99 }
 0x14b   :  { %1340 = vsyncpa [#allocation4], 1 }
 0x14c   :  { %1342 = vsyncpa [#allocation4 + $0x1], 1 }

</bundles_post_ra>
